<compile_context>
chip_gen: v7x
topology: tpu7x:2x2x1
jax: 0.10.0
libtpu: 0.0.40
codegen_flags: <defaults>
</compile_context>

<pallas_src>
import jax
import jax.numpy as jnp
from jax.experimental import pallas as pl
from jax.experimental.pallas import tpu as pltpu

LANE = 128                # vreg lane width: lane-dense last dim
MAX_TILE_ROWS = 8192      # 8192 * 128 * 4 B = 4 MiB per f32 tile buffer


def _round_up(n: int, m: int) -> int:
    return ((n + m - 1) // m) * m


def _cdiv(n: int, m: int) -> int:
    return -(-n // m)


def linear_kernel(wb_ref, x_ref, o_ref):
    # wb_ref: (2,) f32 in SMEM -> scalar weight and bias, read once per block.
    w = wb_ref[0]
    b = wb_ref[1]
    # Elementwise fused multiply-add on the VPU over a lane-dense tile.
    o_ref[...] = x_ref[...] * w + b


def _run_slab(wb, x2d):
    """Run the lane-dense FMA kernel over a (rows, 128) f32 slab."""
    rows, _ = x2d.shape
    if rows <= 8:
        # Full-array block (explicitly legal even when rows % 8 != 0).
        tile_rows = rows
    else:
        # >= 2 grid steps so v7x's two TensorCores can split the "parallel"
        # axis; cap at 4 MiB/buffer. Ragged last block is masked by Pallas.
        tile_rows = min(MAX_TILE_ROWS, _round_up(_cdiv(rows, 2), 8))
    num_tiles = _cdiv(rows, tile_rows)

    return pl.pallas_call(
        linear_kernel,
        out_shape=jax.ShapeDtypeStruct((rows, LANE), jnp.float32),
        grid=(num_tiles,),
        in_specs=[
            # (2,) scalar params live in SMEM, passed whole every step.
            pl.BlockSpec(memory_space=pltpu.MemorySpace.SMEM),
            # Tiled, double-buffered, lane-dense input blocks.
            pl.BlockSpec((tile_rows, LANE), lambda i: (i, 0)),
        ],
        out_specs=pl.BlockSpec((tile_rows, LANE), lambda i: (i, 0)),
        # Pure elementwise op with identical in/out BlockSpecs: write in place.
        input_output_aliases={1: 0},
        cost_estimate=pl.CostEstimate(
            flops=2 * rows * LANE,
            bytes_accessed=2 * rows * LANE * 4,
            transcendentals=0,
        ),
        compiler_params=pltpu.CompilerParams(
            dimension_semantics=("parallel",),
            vmem_limit_bytes=32 * 1024 * 1024,  # 16 MiB buffered footprint + headroom
        ),
    )(wb, x2d)


def linear_forward(x, weight, bias):
    """x: (B, 1) f32, weight: (1, 1) f32, bias: (1,) f32 -> (B, 1) f32."""
    B, F = x.shape
    assert F == 1

    # Collapse weight + bias into one tiny SMEM array.
    wb = jnp.concatenate(
        [weight.reshape(-1), bias.reshape(-1)]
    ).astype(jnp.float32)  # (2,)

    flat = x.reshape(-1).astype(jnp.float32)

    main = (B // LANE) * LANE   # lane-aligned prefix handled by the kernel
    tail = B - main             # < 128 ragged elements handled by plain XLA

    if main == 0:
        # Tiny batch (< 128): pad up to a single (8, 128) tile; copies are
        # negligible at this size and the kernel still runs.
        padded = jnp.pad(flat, (0, 8 * LANE - B))
        out = _run_slab(wb, padded.reshape(8, LANE)).reshape(-1)[:B]
        return out.reshape(B, 1)

    # Fast path: B % 128 == 0 -> reshapes are free, no pad/slice HBM passes.
    x_main = flat if tail == 0 else flat[:main]
    out_main = _run_slab(wb, x_main.reshape(main // LANE, LANE)).reshape(main)
    if tail == 0:
        return out_main.reshape(B, 1)

    # Ragged tail (< 128 elements): trivial XLA FMA. Avoids padding + slicing
    # the whole slab (two extra full HBM passes on a bandwidth-bound op).
    out_tail = flat[main:] * wb[0] + wb[1]
    return jnp.concatenate([out_main, out_tail]).reshape(B, 1)


if __name__ == "__main__":
    key = jax.random.PRNGKey(0)
    kx, kw, kb = jax.random.split(key, 3)

    # Deterministic parameter init (PyTorch default is U(-1, 1) for in_features=1)
    weight = jax.random.uniform(kw, (1, 1), dtype=jnp.float32, minval=-1.0, maxval=1.0)
    bias = jax.random.uniform(kb, (1,), dtype=jnp.float32, minval=-1.0, maxval=1.0)

    # Cover every wrapper path: tiny (<128), fast path (B%128==0, zero-copy),
    # main + tail split, and a multi-grid-step slab with a ragged last block.
    for B in (8, 256, 777, 3000):
        x = jax.random.normal(kx, (B, 1), dtype=jnp.float32)
        out = jax.block_until_ready(linear_forward(x, weight, bias))
        ref = x @ weight.T + bias
        assert out.shape == (B, 1)
        assert jnp.allclose(out, ref, atol=1e-6), f"mismatch vs reference (B={B})"

    print("KERNEL_OK")
</pallas_src>

<mosaic_0001>
module attributes {stable_mosaic.version = 11 : i64} {
  func.func @linear_kernel(%arg0: i32, %arg1: memref<2xf32, #tpu.memory_space<smem>>, %arg2: memref<8x128xf32, #tpu.memory_space<vmem>>, %arg3: memref<8x128xf32, #tpu.memory_space<vmem>>) attributes {dimension_semantics = [#tpu.dimension_semantics<parallel>], iteration_bounds = array<i64: 1>, scalar_prefetch = 0 : i64, scratch_operands = 0 : i64, tpu.core_type = #tpu.core_type<tc>, window_params = [{transform_indices = @transform_0, window_bounds = array<i64: 2>}, {transform_indices = @transform_1, window_bounds = array<i64: 8, 128>}, {transform_indices = @transform_2, window_bounds = array<i64: 8, 128>}]} {
    %c0 = arith.constant 0 : index
    %0 = memref.load %arg1[%c0] : memref<2xf32, #tpu.memory_space<smem>>
    %c1 = arith.constant 1 : index
    %1 = memref.load %arg1[%c1] : memref<2xf32, #tpu.memory_space<smem>>
    %c0_0 = arith.constant 0 : index
    %c0_1 = arith.constant 0 : index
    %2 = vector.load %arg2[%c0_0, %c0_1] : memref<8x128xf32, #tpu.memory_space<vmem>>, vector<8x128xf32>
    %3 = vector.broadcast %0 : f32 to vector<8x128xf32>
    %4 = arith.mulf %2, %3 : vector<8x128xf32>
    %5 = vector.broadcast %1 : f32 to vector<8x128xf32>
    %6 = arith.addf %4, %5 : vector<8x128xf32>
    %c0_2 = arith.constant 0 : index
    %c0_3 = arith.constant 0 : index
    %7 = vector.load %arg3[%c0_2, %c0_3] : memref<8x128xf32, #tpu.memory_space<vmem>>, vector<8x128xf32>
    tpu.vector_store %arg3[%c0_2, %c0_3], %6 {strides = array<i32>} : memref<8x128xf32, #tpu.memory_space<vmem>>, vector<8x128xf32>,
    return
  }
  func.func @transform_0(%arg0: i32) -> i32 {
    %c0_i32 = arith.constant 0 : i32
    %c0_i32_0 = arith.constant 0 : i32
    return %c0_i32 : i32
  }
  func.func @transform_1(%arg0: i32) -> (i32, i32) {
    %c0_i32 = arith.constant 0 : i32
    %c0_i32_0 = arith.constant 0 : i32
    return %arg0, %c0_i32 : i32, i32
  }
  func.func @transform_2(%arg0: i32) -> (i32, i32) {
    %c0_i32 = arith.constant 0 : i32
    %c0_i32_0 = arith.constant 0 : i32
    return %arg0, %c0_i32 : i32, i32
  }
}

</mosaic_0001>

<bundles_post_ra>
// kernel: tpu_custom_call.1
= control target key start
LH: loop header
LB: loop body
LE: loop exit
PB: predicated region body
PF: predicated region fallthrough
CT: control target
= control target key end

     0   :  { %7 = vsyncpa [#allocation5], 0  ;;  %s172_s0 = inlined_call_operand.vmem [shape: f32[2], index: 0, kind: input, shape index: {}]   ;;  %s173_s1 = inlined_call_operand.hbm [shape: f32[8,128], index: 1, kind: input, shape index: {}, may-alias: {1,2}]   ;;  %s174_s2 = inlined_call_operand.hbm [shape: f32[8,128], index: 2, kind: output, shape index: {}, may-alias: {1,2}]  }
   0x1   :  { %8 = vsyncpa [#allocation3], 0 }
   0x2   :  { %9 = vsyncpa [#allocation4], 0  ;;  %s16_s11 = sshll.u32 %s172_s0, 4  ;;  %s17_s11 = int_to_ptr.vmem [resolvable:$true] %s16_s11 }
   0x3   :  { %s65_s12 = scalar_lea.vmem %s17_s11, 16  ;;  %p70_p1 = scmp.lt.s32.totalorder %s17_s11, %s17_s11 }
   0x4   :  { %p66_p0 = scmp.ne.s32.totalorder %s17_s11, %s65_s12  ;;  %p71_p2 = scmp.lt.s32.totalorder %s65_s12, %s65_s12 }
   0x6   :  { %p72_p3 = por %p71_p2, %p70_p1 }
   0x8   :  { %p73_p4 = pnand %p72_p3, %p66_p0 }
   0xa   :  { %76 = shalt.err (!%p73_p4)
}
   0xb   :  { %s127_s13 = smov [#allocation2]   ;;  %s128_s14 = smov [#allocation6]  }
   0xc   :  { %19 = dma.vmem_to_smem %s17_s11, 16, %s127_s13, [#allocation5]  }
   0xd   :  { %s26_s15 = sshll.u32 %s128_s14, 4  ;;  %s77_s18 = scalar_lea.hbm %s173_s1, 128  ;;  %s27_s15 = int_to_ptr.vmem [resolvable:$true] %s26_s15 }
   0xe   :  { %p78_p5 = scmp.ne.s32.totalorder %s173_s1, %s77_s18  ;;  %p81_p6 = scmp.lt.u32.totalorder %s77_s18, %s173_s1 }
  0x10   :  { %p83_p7 = pnand %p81_p6, %p78_p5 }
  0x12   :  { %86 = shalt.err (!%p83_p7)
}
  0x13   :  { %s87_s22 = scalar_lea.vmem %s27_s15, 128  ;;  %p92_p9 = scmp.lt.s32.totalorder %s27_s15, %s27_s15 }
  0x14   :  { %p88_p8 = scmp.ne.s32.totalorder %s27_s15, %s87_s22  ;;  %p93_p10 = scmp.lt.s32.totalorder %s87_s22, %s87_s22 }
  0x16   :  { %p94_p11 = por %p93_p10, %p92_p9 }
  0x18   :  { %p95_p12 = pnand %p94_p11, %p88_p8 }
  0x1a   :  { %98 = shalt.err (!%p95_p12)
}
  0x1b   :  { %29 = dma.hbm_to_vmem [thread:$0]  %s173_s1, 128, %s27_s15, [#allocation3]  }
  0x1c   :  { %121 = dma.done.wait [#allocation5], 16  }
  0x1d   :  { %122 = vsyncadd [#allocation5], 4294967280 }
  0x1e   :  { %123 = dma.done.wait [#allocation3], 128  }
  0x1f   :  { %124 = vsyncadd [#allocation3], 4294967168 }
  0x20   :  { %36 = sfence }
  0x21   :  { %s37_s25 = sld [smem:[#allocation2]]  ;;  %s61_s26 = sld [smem:[#allocation2 + $0x1]]  ;;  %v39_v0 = vld [vmem:[#allocation6] sm:$0xff] }
  0x22   :  { %s129_s27 = smov [#allocation7]  }
  0x23   :  { %s51_s28 = sshll.u32 %s129_s27, 4  ;;  %s52_s28 = int_to_ptr.vmem [resolvable:$true] %s51_s28 }
  0x24   :  { %s99_s29 = scalar_lea.vmem %s52_s28, 128  ;;  %p104_p0 = scmp.lt.s32.totalorder %s52_s28, %s52_s28 }
  0x25   :  { %p100_p13 = scmp.ne.s32.totalorder %s52_s28, %s99_s29  ;;  %p105_p1 = scmp.lt.s32.totalorder %s99_s29, %s99_s29 }
  0x27   :  { %v40_v1 = vstv %s37_s25  ;;  %v42_v2 = vstv %s61_s26  ;;  %p106_p2 = por %p105_p1, %p104_p0 }
  0x28   :  { %v41_v3 = vmul.f32 %v40_v1, %v39_v0 }
  0x29   :  { %p107_p3 = pnand %p106_p2, %p100_p13 }
  0x2a   :  { %v43_v4 = vadd.f32 %v42_v2, %v41_v3 }
  0x2c   :  { %44 = vst [vmem:[#allocation7] sm:$0xff] %v43_v4 }
  0x2d   :  { %110 = shalt.err (!%p107_p3)
}
  0x2e   :  { %s111_s3 = scalar_lea.hbm %s174_s2, 128 }
  0x2f   :  { %p112_p4 = scmp.ne.s32.totalorder %s174_s2, %s111_s3  ;;  %p115_p5 = scmp.lt.u32.totalorder %s111_s3, %s174_s2 }
  0x31   :  { %p117_p6 = pnand %p115_p5, %p112_p4 }
  0x33   :  { %120 = shalt.err (!%p117_p6)
}
  0x34   :  { %54 = dma.vmem_to_hbm [thread:$0]  %s52_s28, 128, %s174_s2, [#allocation4]  }
  0x35   :  { %125 = dma.done.wait [#allocation4], 128  }
  0x36   :  { %126 = vsyncadd [#allocation4], 4294967168 }
  0x37   :  { %58 = vsyncpa [#allocation3], 1 }
  0x38   :  { %59 = vsyncpa [#allocation4], 1 }
  0x39   :  { %60 = vsyncpa [#allocation5], 1 }

</bundles_post_ra>
